<compile_context>
chip_gen: v7x
topology: tpu7x:2x2x1
jax: 0.10.0
libtpu: 0.0.40
codegen_flags: <defaults>
</compile_context>

<pallas_src>
from functools import partial

import numpy as np
import jax
import jax.numpy as jnp
from jax import lax
from jax.experimental import pallas as pl
from jax.experimental.pallas import tpu as pltpu

# ---- illuminant / transform constants (d65), matching the module __init__ --
_XN, _YN, _ZN = 95.0489, 100.0, 108.884
_DELTA = 6.0 / 29.0
_DELTA_CUBED = _DELTA ** 3
_C1 = 3.0 * _DELTA ** 2
_C2 = 4.0 / 29.0
_INV_C1 = 1.0 / _C1
_ONE_THIRD = 1.0 / 3.0

_PIX_PER_ROW = 128                  # pixels per lane-dense row
_ROW_W = 3 * _PIX_PER_ROW           # 384 interleaved values per row
_TR_MAX = 2048                      # max sublane rows per grid step
_SPLIT_MIN_ROWS = 64                # force >=2 grid steps above this (v7x megacore)
_CHUNK_MIN_TR = 1024                # split compute inside the kernel above this
_MIN_PIXELS_FOR_PALLAS = 1 << 16    # below this the fused XLA path wins

# Per-lane constant vectors (value per channel position, X,Y,Z repeating every
# 3 lanes).  Passed as a small kernel operand -- kernels may not capture array
# constants.  With f_next[j] = f[j+1], f_prev[j] = f[j-1]:
#   out[j] = w_next[j]*f_next[j] + w_self[j]*f[j] + w_prev[j]*f_prev[j] + w_bias[j]
# reproduces L*/a*/b* directly in the interleaved layout:
#   X-lane: 116*f_y - 16 ; Y-lane: 500*(f_x - f_y) ; Z-lane: 200*(f_y - f_z)
def _tile3(a, b, c):
    return np.tile(np.array([a, b, c], np.float32), _PIX_PER_ROW)

_LANE_CONSTS = np.zeros((8, _ROW_W), np.float32)
_LANE_CONSTS[0] = _tile3(1.0 / _XN, 1.0 / _YN, 1.0 / _ZN)   # input scaling
_LANE_CONSTS[1] = _tile3(116.0, 0.0, 0.0)                   # coeff of f[j+1]
_LANE_CONSTS[2] = _tile3(0.0, -500.0, -200.0)               # coeff of f[j]
_LANE_CONSTS[3] = _tile3(0.0, 500.0, 200.0)                 # coeff of f[j-1]
_LANE_CONSTS[4] = _tile3(-16.0, 0.0, 0.0)                   # additive constant

# Hardware XLU rotate when lowering for real TPUs; plain jnp.roll (identical
# semantics) when the script is being emulated on a non-TPU backend.
_USE_HW_ROLL = jax.default_backend() == "tpu"


def _lane_roll(x, shift):
    """jnp.roll semantics on the last axis: y[..., j] = x[..., (j - shift) % n]."""
    if _USE_HW_ROLL:
        return pltpu.roll(x, shift, axis=x.ndim - 1)   # XLU lane rotation (free slot)
    return jnp.roll(x, shift, axis=-1)


def _xyz2lab_kernel(consts_ref, q_ref, o_ref, *, chunk_rows, n_chunks):
    """One grid step: a (tr, 384) interleaved [X,Y,Z,...] tile -> L*a*b* in place."""
    inv_scale = consts_ref[0:1, :]     # (1, 384), broadcast over sublanes
    w_next = consts_ref[1:2, :]
    w_self = consts_ref[2:3, :]
    w_prev = consts_ref[3:4, :]
    w_bias = consts_ref[4:5, :]

    def process(row0):
        # Compute in f32 regardless of I/O dtype (v5e has no bf16 VPU/EUP).
        t = q_ref[pl.ds(row0, chunk_rows), :].astype(jnp.float32) * inv_scale
        # f(t): cube root as exp(log(t)/3) -> exactly 2 EUP ops per element.
        cbrt = jnp.exp(jnp.log(jnp.maximum(t, 1e-6)) * _ONE_THIRD)
        lin = t * _INV_C1 + _C2
        ft = jnp.where(t > _DELTA_CUBED, cbrt, lin)

        # +/-1 lane neighbours (same pixel's other channels).  The circular
        # wrap lanes are always multiplied by a zero coefficient.
        f_next = _lane_roll(ft, _ROW_W - 1)   # f_next[j] = ft[j + 1]
        f_prev = _lane_roll(ft, 1)            # f_prev[j] = ft[j - 1]

        out = w_next * f_next + w_self * ft + w_prev * f_prev + w_bias
        o_ref[pl.ds(row0, chunk_rows), :] = out.astype(o_ref.dtype)

    if n_chunks == 1:
        process(0)
    else:
        # Bound live f32 temporaries to ~half a tile while keeping big DMAs.
        def body(c, carry):
            process(pl.multiple_of(c * chunk_rows, chunk_rows))
            return carry
        lax.fori_loop(0, n_chunks, body, 0)


def _round_up(n, m):
    return ((n + m - 1) // m) * m


def _xyz_to_cielab_pallas(q):
    lead = q.shape[:-1]
    M = int(np.prod(lead)) if lead else 1
    dtype = q.dtype
    if M == 0:
        return jnp.zeros(q.shape, dtype)

    # ---- balanced lane-dense tiling over rows of 128 pixels (384 values) ---
    rows = -(-M // _PIX_PER_ROW)
    n_tiles = -(-rows // _TR_MAX)
    if n_tiles == 1 and rows >= _SPLIT_MIN_ROWS:
        n_tiles = 2                            # give v7x's 2nd TensorCore work
    tr = _round_up(-(-rows // n_tiles), 32)    # 32: bf16-safe sublane multiple
    rows_pad = n_tiles * tr
    n_chunks = 2 if tr >= _CHUNK_MIN_TR else 1
    chunk_rows = tr // n_chunks

    # ---- pure reshape of the interleaved data; pad only when unavoidable ---
    flat = q.reshape(-1)
    pad = rows_pad * _ROW_W - flat.size
    if pad:
        flat = jnp.pad(flat, (0, pad))   # zero pixels flow through the linear branch
    x = flat.reshape(rows_pad, _ROW_W)

    itemsize = jnp.dtype(dtype).itemsize
    pipeline_bytes = 4 * tr * _ROW_W * itemsize      # double-buffered in + out
    temp_bytes = 10 * chunk_rows * _ROW_W * 4        # in-kernel f32 temporaries
    vmem_limit = int(min(56 << 20,
                         max(32 << 20, pipeline_bytes + temp_bytes + (4 << 20))))

    out = pl.pallas_call(
        partial(_xyz2lab_kernel, chunk_rows=chunk_rows, n_chunks=n_chunks),
        out_shape=jax.ShapeDtypeStruct((rows_pad, _ROW_W), dtype),
        grid=(n_tiles,),
        in_specs=[
            pl.BlockSpec((8, _ROW_W), lambda i: (0, 0)),    # per-lane const table
            pl.BlockSpec((tr, _ROW_W), lambda i: (i, 0)),   # interleaved pixels
        ],
        out_specs=pl.BlockSpec((tr, _ROW_W), lambda i: (i, 0)),
        compiler_params=pltpu.CompilerParams(
            dimension_semantics=("parallel",),
            vmem_limit_bytes=vmem_limit),
        cost_estimate=pl.CostEstimate(
            flops=30 * M,
            transcendentals=6 * M,
            bytes_accessed=2 * 3 * M * itemsize),
    )(jnp.asarray(_LANE_CONSTS), x)

    out = out.reshape(-1)
    if pad:
        out = out[: 3 * M]
    return out.reshape(*lead, 3)


def _f_elementwise(t):
    cbrt = jnp.exp(jnp.log(jnp.maximum(t, 1e-6)) * _ONE_THIRD)
    return jnp.where(t > _DELTA_CUBED, cbrt, t * _INV_C1 + _C2)


def _xyz_to_cielab_fused(q):
    """Small-input fast path: plain fused XLA elementwise (no layout ops)."""
    x = q.astype(jnp.float32)
    f_x = _f_elementwise(x[..., 0] * (1.0 / _XN))
    f_y = _f_elementwise(x[..., 1] * (1.0 / _YN))
    f_z = _f_elementwise(x[..., 2] * (1.0 / _ZN))
    L = 116.0 * f_y - 16.0
    a = 500.0 * (f_x - f_y)
    b = 200.0 * (f_y - f_z)
    return jnp.stack((L, a, b), axis=-1).astype(q.dtype)


@partial(jax.jit, static_argnames=("force_pallas",))
def xyz_to_cielab(q, *, force_pallas=False):
    """q: float array (..., 3) of XYZ values.  Returns CIE L*a*b*, same shape/dtype."""
    assert q.shape[-1] == 3
    lead = q.shape[:-1]
    M = int(np.prod(lead)) if lead else 1
    if not force_pallas and M < _MIN_PIXELS_FOR_PALLAS:
        return _xyz_to_cielab_fused(q)
    return _xyz_to_cielab_pallas(q)


def _reference(q):
    """Pure-JAX reference of the intended forward pass (true divides + pow)."""
    q = q.astype(jnp.float32)
    X, Y, Z = q[..., 0], q[..., 1], q[..., 2]

    def f(t):
        cbrt = jnp.power(jnp.maximum(t, 1e-6), 1.0 / 3.0)
        return jnp.where(t > _DELTA_CUBED, cbrt, t / _C1 + _C2)

    f_y = f(Y / _YN)
    L = 116.0 * f_y - 16.0
    a = 500.0 * (f(X / _XN) - f_y)
    b = 200.0 * (f_y - f(Z / _ZN))
    return jnp.stack((L, a, b), axis=-1)


if __name__ == "__main__":
    key = jax.random.PRNGKey(0)
    k1, k2, k3 = jax.random.split(key, 3)

    # XYZ tristimulus values roughly in [0, 110] (typical scale for Xn/Yn/Zn ~ 100).
    cases = []
    # Small module-typical shape (B x H x W x 3), Pallas kernel forced.
    q_small = jax.random.uniform(k1, (2, 16, 16, 3), dtype=jnp.float32) * 110.0
    cases.append((q_small, True))
    # Ragged pixel count (not a multiple of 128): exercises padding + 2-step grid.
    q_ragged = jax.random.uniform(k2, (1, 96, 100, 3), dtype=jnp.float32) * 110.0
    cases.append((q_ragged, True))
    # Larger slab: 2-tile grid + in-kernel chunk loop, zero-copy (no padding).
    q_big = jax.random.uniform(k3, (4, 256, 256, 3), dtype=jnp.float32) * 110.0
    cases.append((q_big, True))
    # Public entry point default (fused fast path for small inputs).
    cases.append((q_small, False))

    for q, force in cases:
        lab = jax.block_until_ready(xyz_to_cielab(q, force_pallas=force))
        ref = _reference(q)
        # exp(log(x)/3) vs pow(x, 1/3) and reciprocal-mul vs divide differ by a
        # few f32 ulps; the 500x/200x output scales amplify that, hence atol.
        np.testing.assert_allclose(np.asarray(lab), np.asarray(ref),
                                   rtol=1e-4, atol=1e-2)
        assert lab.shape == q.shape and lab.dtype == q.dtype

    print("KERNEL_OK")
</pallas_src>

<mosaic_0001>
module attributes {stable_mosaic.version = 11 : i64} {
  func.func @_xyz2lab_kernel(%arg0: i32, %arg1: memref<8x384xf32, #tpu.memory_space<vmem>>, %arg2: memref<32x384xf32, #tpu.memory_space<vmem>>, %arg3: memref<32x384xf32, #tpu.memory_space<vmem>>) attributes {dimension_semantics = [#tpu.dimension_semantics<parallel>], iteration_bounds = array<i64: 1>, scalar_prefetch = 0 : i64, scratch_operands = 0 : i64, tpu.core_type = #tpu.core_type<tc>, window_params = [{pipeline_mode = #tpu.pipeline_mode<synchronous>, transform_indices = @transform_0, window_bounds = array<i64: 8, 384>}, {transform_indices = @transform_1, window_bounds = array<i64: 32, 384>}, {transform_indices = @transform_2, window_bounds = array<i64: 32, 384>}]} {
    %c0 = arith.constant 0 : index
    %c0_0 = arith.constant 0 : index
    %0 = vector.load %arg1[%c0, %c0_0] : memref<8x384xf32, #tpu.memory_space<vmem>>, vector<1x384xf32>
    %c1 = arith.constant 1 : index
    %c0_1 = arith.constant 0 : index
    %1 = vector.load %arg1[%c1, %c0_1] : memref<8x384xf32, #tpu.memory_space<vmem>>, vector<1x384xf32>
    %c2 = arith.constant 2 : index
    %c0_2 = arith.constant 0 : index
    %2 = vector.load %arg1[%c2, %c0_2] : memref<8x384xf32, #tpu.memory_space<vmem>>, vector<1x384xf32>
    %c3 = arith.constant 3 : index
    %c0_3 = arith.constant 0 : index
    %3 = vector.load %arg1[%c3, %c0_3] : memref<8x384xf32, #tpu.memory_space<vmem>>, vector<1x384xf32>
    %c4 = arith.constant 4 : index
    %c0_4 = arith.constant 0 : index
    %4 = vector.load %arg1[%c4, %c0_4] : memref<8x384xf32, #tpu.memory_space<vmem>>, vector<1x384xf32>
    %c0_5 = arith.constant 0 : index
    %c0_6 = arith.constant 0 : index
    %5 = vector.load %arg2[%c0_5, %c0_6] : memref<32x384xf32, #tpu.memory_space<vmem>>, vector<32x384xf32>
    %6 = vector.broadcast %0 : vector<1x384xf32> to vector<32x384xf32>
    %7 = arith.mulf %5, %6 : vector<32x384xf32>
    %cst = arith.constant 9.99999997E-7 : f32
    %8 = vector.broadcast %cst : f32 to vector<32x384xf32>
    %9 = arith.maximumf %7, %8 : vector<32x384xf32>
    %10 = math.log %9 : vector<32x384xf32>
    %cst_7 = arith.constant 0.333333343 : f32
    %11 = vector.broadcast %cst_7 : f32 to vector<32x384xf32>
    %12 = arith.mulf %10, %11 : vector<32x384xf32>
    %13 = math.exp %12 : vector<32x384xf32>
    %cst_8 = arith.constant 7.7870369 : f32
    %14 = vector.broadcast %cst_8 : f32 to vector<32x384xf32>
    %15 = arith.mulf %7, %14 : vector<32x384xf32>
    %cst_9 = arith.constant 0.137931034 : f32
    %16 = vector.broadcast %cst_9 : f32 to vector<32x384xf32>
    %17 = arith.addf %15, %16 : vector<32x384xf32>
    %cst_10 = arith.constant 0.00885645207 : f32
    %18 = vector.broadcast %cst_10 : f32 to vector<32x384xf32>
    %19 = arith.cmpf ogt, %7, %18 : vector<32x384xf32>
    %20 = arith.select %19, %13, %17 : vector<32x384xi1>, vector<32x384xf32>
    %21 = vector.extract_strided_slice %20 {offsets = [0, 1], sizes = [32, 383], strides = [1, 1]} : vector<32x384xf32> to vector<32x383xf32>
    %22 = vector.extract_strided_slice %20 {offsets = [0, 0], sizes = [32, 1], strides = [1, 1]} : vector<32x384xf32> to vector<32x1xf32>
    %23 = tpu.concatenate %21, %22 in 1 : vector<32x383xf32>, vector<32x1xf32> -> vector<32x384xf32>
    %24 = vector.extract_strided_slice %20 {offsets = [0, 383], sizes = [32, 1], strides = [1, 1]} : vector<32x384xf32> to vector<32x1xf32>
    %25 = vector.extract_strided_slice %20 {offsets = [0, 0], sizes = [32, 383], strides = [1, 1]} : vector<32x384xf32> to vector<32x383xf32>
    %26 = tpu.concatenate %24, %25 in 1 : vector<32x1xf32>, vector<32x383xf32> -> vector<32x384xf32>
    %27 = vector.broadcast %1 : vector<1x384xf32> to vector<32x384xf32>
    %28 = arith.mulf %27, %23 : vector<32x384xf32>
    %29 = vector.broadcast %2 : vector<1x384xf32> to vector<32x384xf32>
    %30 = arith.mulf %29, %20 : vector<32x384xf32>
    %31 = arith.addf %28, %30 : vector<32x384xf32>
    %32 = vector.broadcast %3 : vector<1x384xf32> to vector<32x384xf32>
    %33 = arith.mulf %32, %26 : vector<32x384xf32>
    %34 = arith.addf %31, %33 : vector<32x384xf32>
    %35 = vector.broadcast %4 : vector<1x384xf32> to vector<32x384xf32>
    %36 = arith.addf %34, %35 : vector<32x384xf32>
    %c0_11 = arith.constant 0 : index
    %c0_12 = arith.constant 0 : index
    %37 = vector.load %arg3[%c0_11, %c0_12] : memref<32x384xf32, #tpu.memory_space<vmem>>, vector<32x384xf32>
    tpu.vector_store %arg3[%c0_11, %c0_12], %36 {strides = array<i32>} : memref<32x384xf32, #tpu.memory_space<vmem>>, vector<32x384xf32>,
    return
  }
  func.func @transform_0(%arg0: i32) -> (i32, i32) {
    %c0_i32 = arith.constant 0 : i32
    %c0_i32_0 = arith.constant 0 : i32
    %c0_i32_1 = arith.constant 0 : i32
    return %c0_i32, %c0_i32_0 : i32, i32
  }
  func.func @transform_1(%arg0: i32) -> (i32, i32) {
    %c0_i32 = arith.constant 0 : i32
    %c0_i32_0 = arith.constant 0 : i32
    return %arg0, %c0_i32 : i32, i32
  }
  func.func @transform_2(%arg0: i32) -> (i32, i32) {
    %c0_i32 = arith.constant 0 : i32
    %c0_i32_0 = arith.constant 0 : i32
    return %arg0, %c0_i32 : i32, i32
  }
}

</mosaic_0001>

<bundles_post_ra>
// kernel: xyz_to_cielab.1
= control target key start
LH: loop header
LB: loop body
LE: loop exit
PB: predicated region body
PF: predicated region fallthrough
CT: control target
= control target key end

     0   :  { %v33_v0 = vlaneseq  ;;  %s504_s10 = smov 127   ;;  %vm216_vm12 = vcmask 1039360   ;;  %vm273_vm13 = vcmask 7168   ;;  %s889_s0 = inlined_call_operand.vmem [shape: f32[8,384], index: 0, kind: input, shape index: {}]   ;;  %s890_s1 = inlined_call_operand.vmem [shape: f32[32,384], index: 1, kind: input, shape index: {}]   ;;  %s891_s2 = inlined_call_operand.vmem [shape: f32[32,384], index: 2, kind: output, shape index: {}]  }
   0x1   :  { %v11_v2 = vld [vmem:[%s889_s0] ss:$8 sm:$0x7]  ;;  %v451_v3 = vld [vmem:[%s889_s0 + $0x2] ss:$8 sm:$0x7] }
   0x2   :  { %v34_v1 = vshrl.u32 %v33_v0, 7  ;;  %v22_v7 = vld [vmem:[%s890_s1 + $0x10] sm:$0xff]  ;;  %v20_v8 = vld [vmem:[%s890_s1] sm:$0xff]  ;;  %v23_v9 = vld [vmem:[%s890_s1 + $0x18] sm:$0xff] }
   0x3   :  { %v21_v14 = vld [vmem:[%s890_s1 + $0x8] sm:$0xff]  ;;  %v24_v22 = vld [vmem:[%s890_s1 + $0x20] sm:$0xff]  ;;  %v27_v24 = vld [vmem:[%s890_s1 + $0x38] sm:$0xff] }
   0x4   :  { %v527_v4 = vsub.s32 2, %v34_v1  ;;  %v529_v5 = vsub.s32 0, %v34_v1  ;;  %v531_v6 = vsub.s32 1, %v34_v1  ;;  %v25_v20 = vld [vmem:[%s890_s1 + $0x28] sm:$0xff]  ;;  %v26_v29 = vld [vmem:[%s890_s1 + $0x30] sm:$0xff]  ;;  %v28_v33 = vld [vmem:[%s890_s1 + $0x40] sm:$0xff] }
   0x5   :  { %v29_v32 = vld [vmem:[%s890_s1 + $0x48] sm:$0xff]  ;;  %v31_v38 = vld [vmem:[%s890_s1 + $0x58] sm:$0xff]  ;;  %v30_v43 = vld [vmem:[%s890_s1 + $0x50] sm:$0xff] }
   0x6   :  { %v44_v10 = vrot.slane %v11_v2, %v527_v4  ;;  %v544_v11 = vrot.slane %v451_v3, %v527_v4  ;;  %v36_v12 = vrot.slane %v11_v2, %v529_v5  ;;  %v548_v13 = vrot.slane %v451_v3, %v529_v5 }
   0x7   :  { %v40_v15 = vrot.slane %v11_v2, %v531_v6  ;;  %v555_v16 = vrot.slane %v451_v3, %v531_v6 }
   0x8   :  { %v557_v17 = vmul.f32 %v44_v10, %v22_v7  ;;  %v559_v18 = vmul.f32 %v36_v12, %v20_v8  ;;  %v561_v19 = vmul.f32 %v36_v12, %v23_v9  ;;  %v576_v26 = vmul.f32 %v44_v10, %v25_v20 }
   0x9   :  { %v566_v21 = vmul.f32 %v40_v15, %v21_v14  ;;  %v579_v28 = vmul.f32 %v40_v15, %v24_v22  ;;  %v585_v31 = vmul.f32 %v40_v15, %v27_v24  ;;  %v594_v35 = vmul.f32 %v36_v12, %v26_v29 }
   0xa   :  { %v62_v23 = vmax.f32 %v557_v17, 1e-06  ;;  %v60_v25 = vmax.f32 %v559_v18, 1e-06  ;;  %v63_v27 = vmax.f32 %v561_v19, 1e-06  ;;  %v597_v37 = vmul.f32 %v36_v12, %v29_v32 }
   0xb   :  { %v61_v30 = vmax.f32 %v566_v21, 1e-06  ;;  %v65_v34 = vmax.f32 %v576_v26, 1e-06  ;;  %v64_v36 = vmax.f32 %v579_v28, 1e-06  ;;  %v603_v40 = vmul.f32 %v44_v10, %v28_v33 }
   0xc   :  { %456 = vlog2.f32 %v62_v23  ;;  %v67_v39 = vmax.f32 %v585_v31, 1e-06  ;;  %v66_v41 = vmax.f32 %v594_v35, 1e-06  ;;  %v606_v42 = vmul.f32 %v44_v10, %v31_v38 }
   0xd   :  { %458 = vlog2.f32 %v60_v25  ;;  %v134_v44 = vmul.f32 7.787037, %v557_v17  ;;  %v132_v45 = vmul.f32 7.787037, %v559_v18  ;;  %v69_v46 = vmax.f32 %v597_v37, 1e-06 }
   0xe   :  { %460 = vlog2.f32 %v63_v27  ;;  %v135_v47 = vmul.f32 7.787037, %v561_v19  ;;  %v68_v48 = vmax.f32 %v603_v40, 1e-06  ;;  %v616_v50 = vmul.f32 %v40_v15, %v30_v43 }
   0xf   :  { %462 = vlog2.f32 %v61_v30  ;;  %v71_v53 = vmax.f32 %v606_v42, 1e-06  ;;  %v619_v55 = vadd.f32 0.13793103, %v134_v44  ;;  %v621_v57 = vadd.f32 0.13793103, %v132_v45 }
  0x10   :  { %464 = vlog2.f32 %v65_v34  ;;  %v623_v61 = vadd.f32 0.13793103, %v135_v47  ;;  %v70_v0 = vmax.f32 %v616_v50, 1e-06  ;;  %v133_v7 = vmul.f32 7.787037, %v566_v21 }
  0x11   :  { %466 = vlog2.f32 %v64_v36  ;;  %vm158_vm0 = vcmp.gt.f32.partialorder %v557_v17, 0.008856452  ;;  %v137_v20 = vmul.f32 7.787037, %v576_v26  ;;  %vm156_vm1 = vcmp.gt.f32.partialorder %v559_v18, 0.008856452 }
  0x12   :  { %468 = vlog2.f32 %v67_v39  ;;  %vm159_vm2 = vcmp.gt.f32.partialorder %v561_v19, 0.008856452  ;;  %v145_v29 = vadd.f32 0.13793103, %v133_v7  ;;  %v136_v32 = vmul.f32 7.787037, %v579_v28 }
  0x13   :  { %470 = vlog2.f32 %v66_v41  ;;  %vm157_vm3 = vcmp.gt.f32.partialorder %v566_v21, 0.008856452  ;;  %v139_v43 = vmul.f32 7.787037, %v585_v31  ;;  %vm161_vm4 = vcmp.gt.f32.partialorder %v576_v26, 0.008856452 }
  0x14   :  { %472 = vlog2.f32 %v69_v46  ;;  %vm160_vm5 = vcmp.gt.f32.partialorder %v579_v28, 0.008856452  ;;  %vm163_vm6 = vcmp.gt.f32.partialorder %v585_v31, 0.008856452  ;;  %vm162_vm7 = vcmp.gt.f32.partialorder %v594_v35, 0.008856452 }
  0x15   :  { %474 = vlog2.f32 %v68_v48  ;;  %v151_v17 = vadd.f32 0.13793103, %v139_v43  ;;  %vm165_vm8 = vcmp.gt.f32.partialorder %v597_v37, 0.008856452  ;;  %vm164_vm9 = vcmp.gt.f32.partialorder %v603_v40, 0.008856452 }
  0x16   :  { %v457_v49 = vpop.eup %456  ;;  %476 = vlog2.f32 %v71_v53  ;;  %vm167_vm10 = vcmp.gt.f32.partialorder %v606_v42, 0.008856452  ;;  %vm166_vm11 = vcmp.gt.f32.partialorder %v616_v50, 0.008856452 }
  0x17   :  { %v459_v51 = vpop.eup %458  ;;  %v77_v52 = vmul.f32 0.6931472, %v457_v49  ;;  %478 = vlog2.f32 %v70_v0 }
  0x18   :  { %v461_v54 = vpop.eup %460  ;;  %v73_v56 = vmul.f32 0.6931472, %v459_v51  ;;  %v450_v51 = vld [vmem:[%s889_s0 + $0x1] ss:$8 sm:$0x7] }
  0x19   :  { %v463_v58 = vpop.eup %462  ;;  %v98_v59 = vmul.f32 0.33333334, %v77_v52  ;;  %v79_v60 = vmul.f32 0.6931472, %v461_v54 }
  0x1a   :  { %v96_v62 = vmul.f32 0.33333334, %v73_v56  ;;  %v75_v63 = vmul.f32 0.6931472, %v463_v58  ;;  %v465_v1 = vpop.eup %464  ;;  %v639_v58 = vrot.slane %v450_v51, %v527_v4 }
  0x1b   :  { %v112_v2 = vmul.f32 1.442695, %v98_v59  ;;  %v99_v3 = vmul.f32 0.33333334, %v79_v60  ;;  %v467_v8 = vpop.eup %466  ;;  %v83_v12 = vmul.f32 0.6931472, %v465_v1  ;;  %v642_v59 = vrot.slane %v450_v51, %v529_v5 }
  0x1c   :  { %v108_v9 = vmul.f32 1.442695, %v96_v62  ;;  %v97_v10 = vmul.f32 0.33333334, %v75_v63  ;;  %v469_v14 = vpop.eup %468  ;;  %v81_v22 = vmul.f32 0.6931472, %v467_v8  ;;  %v645_v60 = vrot.slane %v450_v51, %v531_v6 }
  0x1d   :  { %480 = vpow2.f32 %v112_v2  ;;  %v114_v15 = vmul.f32 1.442695, %v99_v3  ;;  %v101_v24 = vmul.f32 0.33333334, %v83_v12  ;;  %v87_v25 = vmul.f32 0.6931472, %v469_v14  ;;  %v471_v27 = vpop.eup %470 }
  0x1e   :  { %482 = vpow2.f32 %v108_v9  ;;  %v110_v23 = vmul.f32 1.442695, %v97_v10  ;;  %v100_v30 = vmul.f32 0.33333334, %v81_v22  ;;  %v473_v33 = vpop.eup %472  ;;  %v85_v38 = vmul.f32 0.6931472, %v471_v27 }
  0x1f   :  { %484 = vpow2.f32 %v114_v15  ;;  %v118_v34 = vmul.f32 1.442695, %v101_v24  ;;  %v103_v36 = vmul.f32 0.33333334, %v87_v25  ;;  %v475_v39 = vpop.eup %474  ;;  %v91_v44 = vmul.f32 0.6931472, %v473_v33 }
  0x20   :  { %486 = vpow2.f32 %v110_v23  ;;  %v116_v41 = vmul.f32 1.442695, %v100_v30  ;;  %v102_v46 = vmul.f32 0.33333334, %v85_v38  ;;  %v89_v47 = vmul.f32 0.6931472, %v475_v39  ;;  %v477_v48 = vpop.eup %476 }
  0x21   :  { %488 = vpow2.f32 %v118_v34  ;;  %v122_v45 = vmul.f32 1.442695, %v103_v36  ;;  %v105_v49 = vmul.f32 0.33333334, %v91_v44  ;;  %v95_v54 = vmul.f32 0.6931472, %v477_v48  ;;  %v479_v62 = vpop.eup %478 }
  0x22   :  { %490 = vpow2.f32 %v116_v41  ;;  %v120_v52 = vmul.f32 1.442695, %v102_v46  ;;  %v104_v53 = vmul.f32 0.33333334, %v89_v47  ;;  %v149_v63 = vadd.f32 0.13793103, %v137_v20 }
  0x23   :  { %492 = vpow2.f32 %v122_v45  ;;  %v126_v56 = vmul.f32 1.442695, %v105_v49  ;;  %v107_v1 = vmul.f32 0.33333334, %v95_v54  ;;  %v148_v3 = vadd.f32 0.13793103, %v136_v32 }
  0x24   :  { %494 = vpow2.f32 %v120_v52  ;;  %v124_v0 = vmul.f32 1.442695, %v104_v53  ;;  %v93_v7 = vmul.f32 0.6931472, %v479_v62  ;;  %v138_v10 = vmul.f32 7.787037, %v594_v35 }
  0x25   :  { %496 = vpow2.f32 %v126_v56  ;;  %v130_v12 = vmul.f32 1.442695, %v107_v1  ;;  %v141_v25 = vmul.f32 7.787037, %v597_v37  ;;  %v140_v27 = vmul.f32 7.787037, %v603_v40 }
  0x26   :  { %498 = vpow2.f32 %v124_v0  ;;  %v150_v21 = vadd.f32 0.13793103, %v138_v10  ;;  %v142_v45 = vmul.f32 7.787037, %v616_v50 }
  0x27   :  { %v481_v2 = vpop.eup %480  ;;  %500 = vpow2.f32 %v130_v12  ;;  %v153_v38 = vadd.f32 0.13793103, %v141_v25  ;;  %v152_v41 = vadd.f32 0.13793103, %v140_v27 }
  0x28   :  { %v483_v8 = vpop.eup %482  ;;  %v651_v9 = vsel %vm158_vm0, %v481_v2, %v619_v55  ;;  %v106_v55 = vmul.f32 0.33333334, %v93_v7  ;;  %v154_v53 = vadd.f32 0.13793103, %v142_v45 }
  0x29   :  { %v485_v14 = vpop.eup %484  ;;  %196 = vrot.lane.b32.xlu1 %v651_v9, %s504_s10  ;;  %v658_v15 = vmul.f32 %v544_v11, %v651_v9  ;;  %v663_v20 = vsel %vm156_vm1, %v483_v8, %v621_v57 }
  0x2a   :  { %v487_v22 = vpop.eup %486  ;;  %192 = vrot.lane.b32.xlu0 %v663_v20, %s504_s10  ;;  %v669_v23 = vmul.f32 %v548_v13, %v663_v20  ;;  %v674_v24 = vsel %vm159_vm2, %v485_v14, %v623_v61  ;;  %v128_v30 = vmul.f32 1.442695, %v106_v55 }
  0x2b   :  { %v679_v18 = vmul.f32 %v548_v13, %v674_v24  ;;  %v683_v57 = vsel %vm157_vm3, %v487_v22, %v145_v29  ;;  %v489_v32 = vpop.eup %488  ;;  %v143_v29 = vmul.f32 7.787037, %v606_v42 }
  0x2c   :  { %v688_v19 = vmul.f32 %v555_v16, %v683_v57  ;;  %v491_v61 = vpop.eup %490  ;;  %v173_v33 = vsel %vm161_vm4, %v489_v32, %v149_v63  ;;  %502 = vpow2.f32 %v128_v30  ;;  %v453_v63 = vld [vmem:[%s889_s0 + $0x4] ss:$8 sm:$0x7] }
  0x2d   :  { %198 = vrot.lane.b32.xlu1 %v674_v24, %s504_s10  ;;  %v493_v34 = vpop.eup %492  ;;  %v699_v36 = vmul.f32 %v544_v11, %v173_v33  ;;  %v172_v31 = vsel %vm160_vm5, %v491_v61, %v148_v3  ;;  %v155_v46 = vadd.f32 0.13793103, %v143_v29  ;;  %v760_v3 = vrot.slane %v453_v63, %v531_v6 }
  0x2e   :  { %194 = vrot.lane.b32.xlu0 %v683_v57, %s504_s10  ;;  %v705_v26 = vmul.f32 %v555_v16, %v172_v31  ;;  %v175_v39 = vsel %vm163_vm6, %v493_v34, %v151_v17  ;;  %v495_v43 = vpop.eup %494 }
  0x2f   :  { %v709_v44 = vmul.f32 %v555_v16, %v175_v39  ;;  %v497_v28 = vpop.eup %496  ;;  %v174_v35 = vsel %vm162_vm7, %v495_v43, %v150_v21 }
  0x30   :  { %v499_v47 = vpop.eup %498  ;;  %v716_v48 = vmul.f32 %v548_v13, %v174_v35  ;;  %v177_v37 = vsel %vm165_vm8, %v497_v28, %v153_v38 }
  0x31   :  { %202 = vrot.lane.b32.xlu1 %v173_v33, %s504_s10  ;;  %v720_v49 = vmul.f32 %v548_v13, %v177_v37  ;;  %v176_v40 = vsel %vm164_vm9, %v499_v47, %v152_v41  ;;  %v501_v51 = vpop.eup %500  ;;  %v452_v13 = vld [vmem:[%s889_s0 + $0x3] ss:$8 sm:$0x7]  ;;  %s505_s0 = smov 1  }
  0x32   :  { %200 = vrot.lane.b32.xlu0 %v172_v31, %s504_s10  ;;  %v723_v52 = vmul.f32 %v544_v11, %v176_v40  ;;  %v179_v54 = vsel %vm167_vm10, %v501_v51, %v155_v46  ;;  %v742_v50 = vrot.slane %v452_v13, %v527_v4  ;;  %v749_v1 = vrot.slane %v452_v13, %v529_v5 }
  0x33   :  { %v729_v56 = vmul.f32 %v544_v11, %v179_v54  ;;  %v745_v11 = vrot.slane %v453_v63, %v527_v4  ;;  %v752_v2 = vrot.slane %v452_v13, %v531_v6 }
  0x35   :  { %206 = vrot.lane.b32.xlu1 %v175_v39, %s504_s10 }
  0x36   :  { %204 = vrot.lane.b32.xlu0 %v174_v35, %s504_s10  ;;  %v503_v42 = vpop.eup %502 }
  0x37   :  { %v178_v62 = vsel %vm166_vm11, %v503_v42, %v154_v53 }
  0x38   :  { %v739_v0 = vmul.f32 %v555_v16, %v178_v62  ;;  %v757_v16 = vrot.slane %v453_v63, %v529_v5 }
  0x39   :  { %210 = vrot.lane.b32.xlu1 %v177_v37, %s504_s10 }
  0x3a   :  { %208 = vrot.lane.b32.xlu0 %v176_v40, %s504_s10 }
  0x3d   :  { %214 = vrot.lane.b32.xlu1 %v179_v54, %s504_s10 }
  0x3e   :  { %212 = vrot.lane.b32.xlu0 %v178_v62, %s504_s10 }
  0x41   :  { %247 = vrot.lane.b32.xlu1 %v173_v33, %s505_s0 }
  0x42   :  { %245 = vrot.lane.b32.xlu0 %v651_v9, %s505_s0 }
  0x45   :  { %251 = vrot.lane.b32.xlu1 %v179_v54, %s505_s0 }
  0x46   :  { %249 = vrot.lane.b32.xlu0 %v176_v40, %s505_s0 }
  0x49   :  { %259 = vrot.lane.b32.xlu1 %v683_v57, %s505_s0 }
  0x4a   :  { %257 = vrot.lane.b32.xlu0 %v663_v20, %s505_s0 }
  0x4d   :  { %263 = vrot.lane.b32.xlu1 %v172_v31, %s505_s0 }
  0x4e   :  { %261 = vrot.lane.b32.xlu0 %v674_v24, %s505_s0 }
  0x51   :  { %267 = vrot.lane.b32.xlu1 %v175_v39, %s505_s0 }
  0x52   :  { %265 = vrot.lane.b32.xlu0 %v174_v35, %s505_s0 }
  0x55   :  { %271 = vrot.lane.b32.xlu1 %v178_v62, %s505_s0 }
  0x56   :  { %269 = vrot.lane.b32.xlu0 %v177_v37, %s505_s0 }
  0x9b   :  { %v197_v4 = vpop.permute.xlu1 %196 }
  0x9c   :  { %v193_v5 = vpop.permute.xlu0 %192 }
  0x9d   :  { %v241_v6 = vsel %vm216_vm12, %v197_v4, %v193_v5 }
  0x9e   :  { %v316_v7 = vmul.f32 %v639_v58, %v241_v6 }
  0x9f   :  { %v199_v8 = vpop.permute.xlu1 %198 }
  0xa0   :  { %v356_v9 = vadd.f32 %v658_v15, %v316_v7  ;;  %v195_v10 = vpop.permute.xlu0 %194 }
  0xa1   :  { %v217_v12 = vsel %vm216_vm12, %v193_v5, %v195_v10  ;;  %v218_v14 = vsel %vm216_vm12, %v195_v10, %v197_v4 }
  0xa2   :  { %v314_v20 = vmul.f32 %v642_v59, %v217_v12  ;;  %v315_v17 = vmul.f32 %v645_v60, %v218_v14 }
  0xa3   :  { %v203_v55 = vpop.permute.xlu1 %202 }
  0xa4   :  { %v354_v22 = vadd.f32 %v669_v23, %v314_v20  ;;  %v355_v24 = vadd.f32 %v688_v19, %v315_v17  ;;  %v242_v25 = vsel %vm216_vm12, %v203_v55, %v199_v8  ;;  %v201_v57 = vpop.permute.xlu0 %200 }
  0xa5   :  { %v319_v27 = vmul.f32 %v639_v58, %v242_v25  ;;  %v219_v15 = vsel %vm216_vm12, %v199_v8, %v201_v57  ;;  %v220_v30 = vsel %vm216_vm12, %v201_v57, %v203_v55 }
  0xa6   :  { %v317_v32 = vmul.f32 %v642_v59, %v219_v15  ;;  %v318_v61 = vmul.f32 %v645_v60, %v220_v30 }
  0xa7   :  { %v359_v33 = vadd.f32 %v699_v36, %v319_v27  ;;  %v207_v21 = vpop.permute.xlu1 %206 }
  0xa8   :  { %v357_v23 = vadd.f32 %v679_v18, %v317_v32  ;;  %v358_v19 = vadd.f32 %v705_v26, %v318_v61  ;;  %v205_v29 = vpop.permute.xlu0 %204 }
  0xa9   :  { %v221_v34 = vsel %vm216_vm12, %v205_v29, %v207_v21 }
  0xaa   :  { %v320_v31 = vmul.f32 %v642_v59, %v221_v34 }
  0xab   :  { %v211_v38 = vpop.permute.xlu1 %210 }
  0xac   :  { %v787_v39 = vadd.f32 %v716_v48, %v320_v31  ;;  %v209_v41 = vpop.permute.xlu0 %208 }
  0xad   :  { %v222_v43 = vsel %vm216_vm12, %v207_v21, %v209_v41  ;;  %v243_v45 = vsel %vm216_vm12, %v209_v41, %v205_v29 }
  0xae   :  { %v321_v36 = vmul.f32 %v645_v60, %v222_v43  ;;  %v322_v18 = vmul.f32 %v639_v58, %v243_v45 }
  0xaf   :  { %v215_v28 = vpop.permute.xlu1 %214 }
  0xb0   :  { %v794_v26 = vadd.f32 %v709_v44, %v321_v36  ;;  %v362_v35 = vadd.f32 %v723_v52, %v322_v18  ;;  %v244_v46 = vsel %vm216_vm12, %v215_v28, %v211_v38  ;;  %v213_v47 = vpop.permute.xlu0 %212 }
  0xb1   :  { %v325_v48 = vmul.f32 %v639_v58, %v244_v46  ;;  %v223_v37 = vsel %vm216_vm12, %v211_v38, %v213_v47  ;;  %v224_v40 = vsel %vm216_vm12, %v213_v47, %v215_v28 }
  0xb2   :  { %v323_v51 = vmul.f32 %v642_v59, %v223_v37  ;;  %v324_v53 = vmul.f32 %v645_v60, %v224_v40 }
  0xb3   :  { %v804_v54 = vadd.f32 %v729_v56, %v325_v48  ;;  %v248_v44 = vpop.permute.xlu1 %247 }
  0xb4   :  { %v807_v42 = vadd.f32 %v720_v49, %v323_v51  ;;  %v810_v52 = vadd.f32 %v739_v0, %v324_v53  ;;  %v246_v62 = vpop.permute.xlu0 %245 }
  0xb7   :  { %v252_v58 = vpop.permute.xlu1 %251 }
  0xb8   :  { %v250_v13 = vpop.permute.xlu0 %249 }
  0xbb   :  { %v260_v63 = vpop.permute.xlu1 %259 }
  0xbc   :  { %v275_v4 = vsel %vm273_vm13, %v260_v63, %v246_v62  ;;  %v258_v59 = vpop.permute.xlu0 %257 }
  0xbd   :  { %v384_v60 = vmul.f32 %v742_v50, %v275_v4  ;;  %v274_v56 = vsel %vm273_vm13, %v258_v59, %v260_v63  ;;  %v294_v5 = vsel %vm273_vm13, %v246_v62, %v258_v59 }
  0xbe   :  { %v382_v49 = vmul.f32 %v749_v1, %v294_v5  ;;  %v383_v6 = vmul.f32 %v752_v2, %v274_v56 }
  0xbf   :  { %v396_v0 = vadd.f32 %v384_v60, %v356_v9  ;;  %v264_v7 = vpop.permute.xlu1 %263 }
  0xc0   :  { %v394_v8 = vadd.f32 %v382_v49, %v354_v22  ;;  %v395_v10 = vadd.f32 %v383_v6, %v355_v24  ;;  %v277_v12 = vsel %vm273_vm13, %v264_v7, %v248_v44  ;;  %v262_v14 = vpop.permute.xlu0 %261 }
  0xc1   :  { %v424_v20 = vadd.f32 %v745_v11, %v396_v0  ;;  %v387_v17 = vmul.f32 %v742_v50, %v277_v12  ;;  %v276_v55 = vsel %vm273_vm13, %v262_v14, %v264_v7  ;;  %v295_v25 = vsel %vm273_vm13, %v248_v44, %v262_v14 }
  0xc2   :  { %v422_v57 = vadd.f32 %v757_v16, %v394_v8  ;;  %v423_v27 = vadd.f32 %v760_v3, %v395_v10  ;;  %v385_v9 = vmul.f32 %v749_v1, %v295_v25  ;;  %v386_v22 = vmul.f32 %v752_v2, %v276_v55 }
  0xc3   :  { %436 = vst [vmem:[%s891_s2 + $0x10] sm:$0xff] %v424_v20  ;;  %v399_v24 = vadd.f32 %v387_v17, %v359_v33  ;;  %v268_v15 = vpop.permute.xlu1 %267 }
  0xc4   :  { %434 = vst [vmem:[%s891_s2] sm:$0xff] %v422_v57  ;;  %435 = vst [vmem:[%s891_s2 + $0x8] sm:$0xff] %v423_v27  ;;  %v397_v30 = vadd.f32 %v385_v9, %v357_v23  ;;  %v398_v32 = vadd.f32 %v386_v22, %v358_v19  ;;  %v279_v61 = vsel %vm273_vm13, %v268_v15, %v250_v13  ;;  %v266_v21 = vpop.permute.xlu0 %265 }
  0xc5   :  { %v427_v29 = vadd.f32 %v745_v11, %v399_v24  ;;  %v390_v34 = vmul.f32 %v742_v50, %v279_v61  ;;  %v278_v33 = vsel %vm273_vm13, %v266_v21, %v268_v15  ;;  %v296_v31 = vsel %vm273_vm13, %v250_v13, %v266_v21 }
  0xc6   :  { %v425_v38 = vadd.f32 %v757_v16, %v397_v30  ;;  %v426_v41 = vadd.f32 %v760_v3, %v398_v32  ;;  %v388_v43 = vmul.f32 %v749_v1, %v296_v31  ;;  %v389_v23 = vmul.f32 %v752_v2, %v278_v33 }
  0xc7   :  { %439 = vst [vmem:[%s891_s2 + $0x28] sm:$0xff] %v427_v29  ;;  %v402_v19 = vadd.f32 %v390_v34, %v362_v35  ;;  %v272_v45 = vpop.permute.xlu1 %271 }
  0xc8   :  { %437 = vst [vmem:[%s891_s2 + $0x18] sm:$0xff] %v425_v38  ;;  %438 = vst [vmem:[%s891_s2 + $0x20] sm:$0xff] %v426_v41  ;;  %v400_v36 = vadd.f32 %v388_v43, %v787_v39  ;;  %v401_v18 = vadd.f32 %v389_v23, %v794_v26  ;;  %v281_v28 = vsel %vm273_vm13, %v272_v45, %v252_v58  ;;  %v270_v46 = vpop.permute.xlu0 %269 }
  0xc9   :  { %v430_v47 = vadd.f32 %v745_v11, %v402_v19  ;;  %v393_v35 = vmul.f32 %v742_v50, %v281_v28  ;;  %v280_v48 = vsel %vm273_vm13, %v270_v46, %v272_v45  ;;  %v297_v37 = vsel %vm273_vm13, %v252_v58, %v270_v46 }
  0xca   :  { %v428_v40 = vadd.f32 %v757_v16, %v400_v36  ;;  %v429_v51 = vadd.f32 %v760_v3, %v401_v18  ;;  %v391_v53 = vmul.f32 %v749_v1, %v297_v37  ;;  %v392_v39 = vmul.f32 %v752_v2, %v280_v48 }
  0xcb   :  { %442 = vst [vmem:[%s891_s2 + $0x40] sm:$0xff] %v430_v47  ;;  %v405_v26 = vadd.f32 %v393_v35, %v804_v54 }
  0xcc   :  { %440 = vst [vmem:[%s891_s2 + $0x30] sm:$0xff] %v428_v40  ;;  %441 = vst [vmem:[%s891_s2 + $0x38] sm:$0xff] %v429_v51  ;;  %v403_v50 = vadd.f32 %v391_v53, %v807_v42  ;;  %v404_v1 = vadd.f32 %v392_v39, %v810_v52 }
  0xcd   :  { %v433_v2 = vadd.f32 %v745_v11, %v405_v26 }
  0xce   :  { %v431_v44 = vadd.f32 %v757_v16, %v403_v50  ;;  %v432_v62 = vadd.f32 %v760_v3, %v404_v1 }
  0xcf   :  { %445 = vst [vmem:[%s891_s2 + $0x58] sm:$0xff] %v433_v2 }
  0xd0   :  { %443 = vst [vmem:[%s891_s2 + $0x48] sm:$0xff] %v431_v44  ;;  %444 = vst [vmem:[%s891_s2 + $0x50] sm:$0xff] %v432_v62 }

</bundles_post_ra>
